<compile_context>
chip_gen: v5e
topology: v5e:2x2
jax: 0.10.0
libtpu: 0.0.40
codegen_flags: <defaults>
</compile_context>

<pallas_src>
import jax
import jax.numpy as jnp
from jax.experimental import pallas as pl
from jax.experimental.pallas import tpu as pltpu


def _round_up(x, m):
    return ((x + m - 1) // m) * m


def _expand_matrix(n_in, group, dtype=jnp.float32):
    """(n_in, n_in*group) with M[i, j] = 1 iff j // group == i."""
    r = jnp.arange(n_in)[:, None]
    c = jnp.arange(n_in * group)[None, :]
    return (c // group == r).astype(dtype)


def _reduce_matrix(n_in, group, n_out, dtype=jnp.float32):
    """(n_in, n_out) with M[j, k] = 1 iff j % group == k."""
    r = jnp.arange(n_in)[:, None]
    c = jnp.arange(n_out)[None, :]
    return (r % group == c).astype(dtype)


def _dynamic_actor_kernel(obs_ref, dw1_ref, db1_ref, dw2_ref, db2_ref,
                          w1_ref, b1_ref, w2_ref, b2_ref,
                          e1_ref, s1_ref, e2_ref, s2_ref, s3_ref,
                          probs_ref, logits_ref):
    # obs_ref: (bb, I)        dw1_ref: (bb, I*H)    db1_ref: (bb, H)
    # dw2_ref: (bb, H*O)      db2_ref: (bb, O)
    # w1_ref:  (I, H)         b1_ref:  (1, H)
    # w2_ref:  (H, O_pad)     b2_ref:  (1, O_pad)   (base params, lane-padded)
    # e1_ref:  (I, I*H)       s1_ref:  (I*H, H)
    # e2_ref:  (H, H*O)       s2_ref:  (H*O, O_pad) s3_ref: (O, O_pad)
    # probs_ref / logits_ref: (bb, O_pad)
    f32 = jnp.float32
    O = db2_ref.shape[-1]

    obs = obs_ref[...].astype(f32)                                    # (bb, I)

    # ---------------- layer 1 ----------------------------------------------
    # Shared base weight: one (bb, I) @ (I, H) MXU matmul for the whole block.
    h = jnp.dot(obs, w1_ref[...].astype(f32), preferred_element_type=f32)
    # Per-sample weight delta via expand / elementwise / strided-lane reduce:
    #   h_delta[b, h] = sum_i obs[b, i] * dw1[b, i, h]
    obs_exp = jnp.dot(obs, e1_ref[...], preferred_element_type=f32)   # (bb, I*H)
    prod1 = obs_exp * dw1_ref[...].astype(f32)                        # (bb, I*H)
    h = h + jnp.dot(prod1, s1_ref[...], preferred_element_type=f32)   # (bb, H)
    h = h + b1_ref[...].astype(f32) + db1_ref[...].astype(f32)
    hidden = jnp.maximum(h, 0.0)                                      # (bb, H)

    # ---------------- layer 2 (lane-dense width O_pad) ----------------------
    # Shared base weight at padded width: (bb, H) @ (H, O_pad) MXU matmul.
    logits = jnp.dot(hidden, w2_ref[...].astype(f32),
                     preferred_element_type=f32)
    logits = logits + b2_ref[...].astype(f32)                         # (bb, O_pad)
    # Per-sample delta; S2 scatters directly into the first O of O_pad lanes.
    hid_exp = jnp.dot(hidden, e2_ref[...], preferred_element_type=f32)  # (bb, H*O)
    prod2 = hid_exp * dw2_ref[...].astype(f32)                        # (bb, H*O)
    logits = logits + jnp.dot(prod2, s2_ref[...], preferred_element_type=f32)
    # Per-sample bias delta scattered into the first O lanes.
    logits = logits + jnp.dot(db2_ref[...].astype(f32), s3_ref[...],
                              preferred_element_type=f32)

    # ---------------- masked softmax over the O valid lanes -----------------
    lane = jax.lax.broadcasted_iota(jnp.int32, logits.shape, 1)
    valid = lane < O
    masked = jnp.where(valid, logits, jnp.float32(-1e30))
    m = jnp.max(masked, axis=-1, keepdims=True)
    e = jnp.where(valid, jnp.exp(masked - m), 0.0)
    probs = e * pl.reciprocal(jnp.sum(e, axis=-1, keepdims=True), approx=True)

    logits_ref[...] = logits.astype(logits_ref.dtype)
    probs_ref[...] = probs.astype(probs_ref.dtype)


def dynamic_actor_forward(obs, delta_w1, delta_b1, delta_w2, delta_b2,
                          w1, b1, w2, b2, *, block_b=512):
    """Returns (probs, logits), each of shape (B, output_size)."""
    B, I = obs.shape
    H = w1.shape[1]
    O = w2.shape[1]
    O_pad = 128  # lane-dense output width

    # Batch blocking: bb is a multiple of 8 (sublane granularity), capped so
    # the double-buffered working set stays a few MiB on every TPU gen.
    bb = min(block_b, _round_up(B, 8))
    B_pad = _round_up(B, bb)

    def pad_b(x):
        if x.shape[0] == B_pad:
            return x
        pads = ((0, B_pad - x.shape[0]),) + ((0, 0),) * (x.ndim - 1)
        return jnp.pad(x, pads)

    # Module semantics: obs = obs.float().  The big per-sample delta tensors
    # are NOT copied/cast in the wrapper: reshape of contiguous trailing dims
    # is free, and the kernel upcasts after load (deltas may be bf16 in HBM).
    obs_p = obs if obs.dtype == jnp.float32 else obs.astype(jnp.float32)
    obs_p = pad_b(obs_p)
    dw1_p = pad_b(delta_w1.reshape(B, I * H))    # (B_pad, I*H) lane-dense
    db1_p = pad_b(delta_b1)                      # (B_pad, H)
    dw2_p = pad_b(delta_w2.reshape(B, H * O))    # (B_pad, H*O) lane-dense
    db2_p = pad_b(delta_b2)                      # (B_pad, O)

    # Grid-invariant base params.  Layer-2 base is lane-padded once (tiny) so
    # the second matmul and the output stores are lane-dense.
    b1_2 = b1.reshape(1, H)
    w2_pad = jnp.zeros((H, O_pad), w2.dtype).at[:, :O].set(w2)
    b2_pad = jnp.zeros((1, O_pad), b2.dtype).at[:, :O].set(b2.reshape(1, O))

    # Tiny grid-invariant 0/1 selector matrices (expand / strided-lane reduce).
    e1 = _expand_matrix(I, H)                    # (I, I*H)
    s1 = _reduce_matrix(I * H, H, H)             # (I*H, H)
    e2 = _expand_matrix(H, O)                    # (H, H*O)
    s2 = _reduce_matrix(H * O, O, O_pad)         # (H*O, O_pad)
    s3 = _reduce_matrix(O, O, O_pad)             # (O, O_pad) identity-scatter

    grid = (B_pad // bb,)

    grid_spec = pltpu.PrefetchScalarGridSpec(
        num_scalar_prefetch=0,
        grid=grid,
        in_specs=[
            pl.BlockSpec((bb, I), lambda g: (g, 0)),          # obs
            pl.BlockSpec((bb, I * H), lambda g: (g, 0)),      # delta_w1 (flat)
            pl.BlockSpec((bb, H), lambda g: (g, 0)),          # delta_b1
            pl.BlockSpec((bb, H * O), lambda g: (g, 0)),      # delta_w2 (flat)
            pl.BlockSpec((bb, O), lambda g: (g, 0)),          # delta_b2
            pl.BlockSpec((I, H), lambda g: (0, 0)),           # base w1 (shared)
            pl.BlockSpec((1, H), lambda g: (0, 0)),           # base b1
            pl.BlockSpec((H, O_pad), lambda g: (0, 0)),       # base w2 (padded)
            pl.BlockSpec((1, O_pad), lambda g: (0, 0)),       # base b2 (padded)
            pl.BlockSpec((I, I * H), lambda g: (0, 0)),       # E1
            pl.BlockSpec((I * H, H), lambda g: (0, 0)),       # S1
            pl.BlockSpec((H, H * O), lambda g: (0, 0)),       # E2
            pl.BlockSpec((H * O, O_pad), lambda g: (0, 0)),   # S2
            pl.BlockSpec((O, O_pad), lambda g: (0, 0)),       # S3
        ],
        out_specs=[
            pl.BlockSpec((bb, O_pad), lambda g: (g, 0)),      # probs  (lane-dense)
            pl.BlockSpec((bb, O_pad), lambda g: (g, 0)),      # logits (lane-dense)
        ],
    )

    probs_p, logits_p = pl.pallas_call(
        _dynamic_actor_kernel,
        out_shape=(jax.ShapeDtypeStruct((B_pad, O_pad), jnp.float32),
                   jax.ShapeDtypeStruct((B_pad, O_pad), jnp.float32)),
        grid_spec=grid_spec,
        compiler_params=pltpu.CompilerParams(
            dimension_semantics=("parallel",),
            vmem_limit_bytes=32 * 1024 * 1024),
    )(obs_p, dw1_p, db1_p, dw2_p, db2_p,
      w1, b1_2, w2_pad, b2_pad, e1, s1, e2, s2, s3)

    return probs_p[:B, :O], logits_p[:B, :O]


def _reference(obs, dw1, db1, dw2, db2, w1, b1, w2, b2):
    # Pure-JAX reference mirroring the PyTorch forward.
    h = jax.nn.relu(jnp.einsum('bi,bih->bh', obs, w1[None] + dw1) + b1 + db1)
    logits = jnp.einsum('bh,bho->bo', h, w2[None] + dw2) + b2 + db2
    return jax.nn.softmax(logits, axis=-1), logits


if __name__ == "__main__":
    # Small shapes consistent with the module: obs_dim=16, hidden=32, n_actions=6
    B, I, H, O = 4, 16, 32, 6

    key = jax.random.PRNGKey(0)
    (k_obs, k_dw1, k_db1, k_dw2, k_db2,
     k_w1, k_b1, k_w2, k_b2) = jax.random.split(key, 9)

    obs = jax.random.normal(k_obs, (B, I), dtype=jnp.float32)
    delta_w1 = 0.1 * jax.random.normal(k_dw1, (B, I, H), dtype=jnp.float32)
    delta_b1 = 0.1 * jax.random.normal(k_db1, (B, H), dtype=jnp.float32)
    delta_w2 = 0.1 * jax.random.normal(k_dw2, (B, H, O), dtype=jnp.float32)
    delta_b2 = 0.1 * jax.random.normal(k_db2, (B, O), dtype=jnp.float32)

    # Module __init__ zero-inits the base params; use small non-zero values
    # (as after training) so the shared-weight MXU path is exercised too.
    w1 = 0.05 * jax.random.normal(k_w1, (I, H), dtype=jnp.float32)
    b1 = 0.05 * jax.random.normal(k_b1, (H,), dtype=jnp.float32)
    w2 = 0.05 * jax.random.normal(k_w2, (H, O), dtype=jnp.float32)
    b2 = 0.05 * jax.random.normal(k_b2, (O,), dtype=jnp.float32)

    probs, logits = dynamic_actor_forward(
        obs, delta_w1, delta_b1, delta_w2, delta_b2, w1, b1, w2, b2)
    jax.block_until_ready((probs, logits))

    ref_probs, ref_logits = _reference(
        obs, delta_w1, delta_b1, delta_w2, delta_b2, w1, b1, w2, b2)

    assert jnp.allclose(logits, ref_logits, atol=5e-4, rtol=5e-4)
    # probs tolerance loosened slightly: pl.reciprocal(approx=True) in softmax.
    assert jnp.allclose(probs, ref_probs, atol=2e-3, rtol=2e-3)
    assert jnp.allclose(jnp.sum(probs, axis=-1), 1.0, atol=2e-3)

    # TODO(synk): Categorical/Normal distribution objects (sampling, log_prob)
    # are host-side constructs; the kernel returns probs/logits which fully
    # parameterize the Categorical branch. The Normal branch (continuous
    # action space with log_std) is not implemented here.
    print("KERNEL_OK")
</pallas_src>

<mosaic_0001>
module attributes {stable_mosaic.version = 11 : i64} {
  func.func @_dynamic_actor_kernel(%arg0: i32, %arg1: memref<8x16xf32, #tpu.memory_space<vmem>>, %arg2: memref<8x512xf32, #tpu.memory_space<vmem>>, %arg3: memref<8x32xf32, #tpu.memory_space<vmem>>, %arg4: memref<8x192xf32, #tpu.memory_space<vmem>>, %arg5: memref<8x6xf32, #tpu.memory_space<vmem>>, %arg6: memref<16x32xf32, #tpu.memory_space<vmem>>, %arg7: memref<1x32xf32, #tpu.memory_space<vmem>>, %arg8: memref<32x128xf32, #tpu.memory_space<vmem>>, %arg9: memref<1x128xf32, #tpu.memory_space<vmem>>, %arg10: memref<16x512xf32, #tpu.memory_space<vmem>>, %arg11: memref<512x32xf32, #tpu.memory_space<vmem>>, %arg12: memref<32x192xf32, #tpu.memory_space<vmem>>, %arg13: memref<192x128xf32, #tpu.memory_space<vmem>>, %arg14: memref<6x128xf32, #tpu.memory_space<vmem>>, %arg15: memref<8x128xf32, #tpu.memory_space<vmem>>, %arg16: memref<8x128xf32, #tpu.memory_space<vmem>>) attributes {dimension_semantics = [#tpu.dimension_semantics<parallel>], iteration_bounds = array<i64: 1>, scalar_prefetch = 0 : i64, scratch_operands = 0 : i64, tpu.core_type = #tpu.core_type<tc>, window_params = [{transform_indices = @transform_0, window_bounds = array<i64: 8, 16>}, {transform_indices = @transform_1, window_bounds = array<i64: 8, 512>}, {transform_indices = @transform_2, window_bounds = array<i64: 8, 32>}, {transform_indices = @transform_3, window_bounds = array<i64: 8, 192>}, {transform_indices = @transform_4, window_bounds = array<i64: 8, 6>}, {pipeline_mode = #tpu.pipeline_mode<synchronous>, transform_indices = @transform_5, window_bounds = array<i64: 16, 32>}, {pipeline_mode = #tpu.pipeline_mode<synchronous>, transform_indices = @transform_6, window_bounds = array<i64: 1, 32>}, {pipeline_mode = #tpu.pipeline_mode<synchronous>, transform_indices = @transform_7, window_bounds = array<i64: 32, 128>}, {pipeline_mode = #tpu.pipeline_mode<synchronous>, transform_indices = @transform_8, window_bounds = array<i64: 1, 128>}, {pipeline_mode = #tpu.pipeline_mode<synchronous>, transform_indices = @transform_9, window_bounds = array<i64: 16, 512>}, {pipeline_mode = #tpu.pipeline_mode<synchronous>, transform_indices = @transform_10, window_bounds = array<i64: 512, 32>}, {pipeline_mode = #tpu.pipeline_mode<synchronous>, transform_indices = @transform_11, window_bounds = array<i64: 32, 192>}, {pipeline_mode = #tpu.pipeline_mode<synchronous>, transform_indices = @transform_12, window_bounds = array<i64: 192, 128>}, {pipeline_mode = #tpu.pipeline_mode<synchronous>, transform_indices = @transform_13, window_bounds = array<i64: 6, 128>}, {transform_indices = @transform_14, window_bounds = array<i64: 8, 128>}, {transform_indices = @transform_15, window_bounds = array<i64: 8, 128>}]} {
    %c0 = arith.constant 0 : index
    %c0_0 = arith.constant 0 : index
    %0 = vector.load %arg1[%c0, %c0_0] : memref<8x16xf32, #tpu.memory_space<vmem>>, vector<8x16xf32>
    %c0_1 = arith.constant 0 : index
    %c0_2 = arith.constant 0 : index
    %1 = vector.load %arg6[%c0_1, %c0_2] : memref<16x32xf32, #tpu.memory_space<vmem>>, vector<16x32xf32>
    %cst = arith.constant dense<0.000000e+00> : vector<8x32xf32>
    %2 = tpu.matmul %0, %1, %cst {dimension_numbers = #tpu.dot_dimension_numbers<[1], [0], [0], [1], [0, 0, 1, 1], [], []>} : vector<8x16xf32>, vector<16x32xf32>, vector<8x32xf32> -> vector<8x32xf32>
    %c0_3 = arith.constant 0 : index
    %c0_4 = arith.constant 0 : index
    %3 = vector.load %arg10[%c0_3, %c0_4] : memref<16x512xf32, #tpu.memory_space<vmem>>, vector<16x512xf32>
    %cst_5 = arith.constant dense<0.000000e+00> : vector<8x512xf32>
    %4 = tpu.matmul %0, %3, %cst_5 {dimension_numbers = #tpu.dot_dimension_numbers<[1], [0], [0], [1], [0, 0, 1, 1], [], []>} : vector<8x16xf32>, vector<16x512xf32>, vector<8x512xf32> -> vector<8x512xf32>
    %c0_6 = arith.constant 0 : index
    %c0_7 = arith.constant 0 : index
    %5 = vector.load %arg2[%c0_6, %c0_7] : memref<8x512xf32, #tpu.memory_space<vmem>>, vector<8x512xf32>
    %6 = arith.mulf %4, %5 : vector<8x512xf32>
    %c0_8 = arith.constant 0 : index
    %c0_9 = arith.constant 0 : index
    %7 = vector.load %arg11[%c0_8, %c0_9] : memref<512x32xf32, #tpu.memory_space<vmem>>, vector<512x32xf32>
    %cst_10 = arith.constant dense<0.000000e+00> : vector<8x32xf32>
    %8 = tpu.matmul %6, %7, %cst_10 {dimension_numbers = #tpu.dot_dimension_numbers<[1], [0], [0], [1], [0, 0, 1, 1], [], []>} : vector<8x512xf32>, vector<512x32xf32>, vector<8x32xf32> -> vector<8x32xf32>
    %9 = arith.addf %2, %8 : vector<8x32xf32>
    %c0_11 = arith.constant 0 : index
    %c0_12 = arith.constant 0 : index
    %10 = vector.load %arg7[%c0_11, %c0_12] : memref<1x32xf32, #tpu.memory_space<vmem>>, vector<1x32xf32>
    %11 = vector.broadcast %10 : vector<1x32xf32> to vector<8x32xf32>
    %12 = arith.addf %9, %11 : vector<8x32xf32>
    %c0_13 = arith.constant 0 : index
    %c0_14 = arith.constant 0 : index
    %13 = vector.load %arg3[%c0_13, %c0_14] : memref<8x32xf32, #tpu.memory_space<vmem>>, vector<8x32xf32>
    %14 = arith.addf %12, %13 : vector<8x32xf32>
    %cst_15 = arith.constant 0.000000e+00 : f32
    %15 = vector.broadcast %cst_15 : f32 to vector<8x32xf32>
    %16 = arith.maximumf %14, %15 : vector<8x32xf32>
    %c0_16 = arith.constant 0 : index
    %c0_17 = arith.constant 0 : index
    %17 = vector.load %arg8[%c0_16, %c0_17] : memref<32x128xf32, #tpu.memory_space<vmem>>, vector<32x128xf32>
    %cst_18 = arith.constant dense<0.000000e+00> : vector<8x128xf32>
    %18 = tpu.matmul %16, %17, %cst_18 {dimension_numbers = #tpu.dot_dimension_numbers<[1], [0], [0], [1], [0, 0, 1, 1], [], []>} : vector<8x32xf32>, vector<32x128xf32>, vector<8x128xf32> -> vector<8x128xf32>
    %c0_19 = arith.constant 0 : index
    %c0_20 = arith.constant 0 : index
    %19 = vector.load %arg9[%c0_19, %c0_20] : memref<1x128xf32, #tpu.memory_space<vmem>>, vector<1x128xf32>
    %20 = vector.broadcast %19 : vector<1x128xf32> to vector<8x128xf32>
    %21 = arith.addf %18, %20 : vector<8x128xf32>
    %c0_21 = arith.constant 0 : index
    %c0_22 = arith.constant 0 : index
    %22 = vector.load %arg12[%c0_21, %c0_22] : memref<32x192xf32, #tpu.memory_space<vmem>>, vector<32x192xf32>
    %cst_23 = arith.constant dense<0.000000e+00> : vector<8x192xf32>
    %23 = tpu.matmul %16, %22, %cst_23 {dimension_numbers = #tpu.dot_dimension_numbers<[1], [0], [0], [1], [0, 0, 1, 1], [], []>} : vector<8x32xf32>, vector<32x192xf32>, vector<8x192xf32> -> vector<8x192xf32>
    %c0_24 = arith.constant 0 : index
    %c0_25 = arith.constant 0 : index
    %24 = vector.load %arg4[%c0_24, %c0_25] : memref<8x192xf32, #tpu.memory_space<vmem>>, vector<8x192xf32>
    %25 = arith.mulf %23, %24 : vector<8x192xf32>
    %c0_26 = arith.constant 0 : index
    %c0_27 = arith.constant 0 : index
    %26 = vector.load %arg13[%c0_26, %c0_27] : memref<192x128xf32, #tpu.memory_space<vmem>>, vector<192x128xf32>
    %cst_28 = arith.constant dense<0.000000e+00> : vector<8x128xf32>
    %27 = tpu.matmul %25, %26, %cst_28 {dimension_numbers = #tpu.dot_dimension_numbers<[1], [0], [0], [1], [0, 0, 1, 1], [], []>} : vector<8x192xf32>, vector<192x128xf32>, vector<8x128xf32> -> vector<8x128xf32>
    %28 = arith.addf %21, %27 : vector<8x128xf32>
    %c0_29 = arith.constant 0 : index
    %c0_30 = arith.constant 0 : index
    %29 = vector.load %arg5[%c0_29, %c0_30] : memref<8x6xf32, #tpu.memory_space<vmem>>, vector<8x6xf32>
    %c0_31 = arith.constant 0 : index
    %c0_32 = arith.constant 0 : index
    %30 = vector.load %arg14[%c0_31, %c0_32] : memref<6x128xf32, #tpu.memory_space<vmem>>, vector<6x128xf32>
    %cst_33 = arith.constant dense<0.000000e+00> : vector<8x128xf32>
    %31 = tpu.matmul %29, %30, %cst_33 {dimension_numbers = #tpu.dot_dimension_numbers<[1], [0], [0], [1], [0, 0, 1, 1], [], []>} : vector<8x6xf32>, vector<6x128xf32>, vector<8x128xf32> -> vector<8x128xf32>
    %32 = arith.addf %28, %31 : vector<8x128xf32>
    %33 = tpu.iota {dimensions = array<i32: 1>} : vector<8x128xi32>
    %c6_i32 = arith.constant 6 : i32
    %34 = vector.broadcast %c6_i32 : i32 to vector<8x128xi32>
    %35 = arith.cmpi slt, %33, %34 : vector<8x128xi32>
    %cst_34 = arith.constant -1.000000e+30 : f32
    %36 = vector.broadcast %cst_34 : f32 to vector<8x128xf32>
    %37 = arith.select %35, %32, %36 : vector<8x128xi1>, vector<8x128xf32>
    %cst_35 = arith.constant dense<0xFF800000> : vector<8xf32>
    %38 = vector.multi_reduction <maximumf>, %37, %cst_35 [1] : vector<8x128xf32> to vector<8xf32>
    %39 = vector.shape_cast %38 : vector<8xf32> to vector<8x1xf32>
    %40 = vector.broadcast %39 : vector<8x1xf32> to vector<8x128xf32>
    %41 = arith.subf %37, %40 : vector<8x128xf32>
    %42 = math.exp %41 : vector<8x128xf32>
    %cst_36 = arith.constant 0.000000e+00 : f32
    %43 = vector.broadcast %cst_36 : f32 to vector<8x128xf32>
    %44 = arith.select %35, %42, %43 : vector<8x128xi1>, vector<8x128xf32>
    %cst_37 = arith.constant dense<0.000000e+00> : vector<8xf32>
    %45 = vector.multi_reduction <add>, %44, %cst_37 [1] : vector<8x128xf32> to vector<8xf32>
    %46 = vector.shape_cast %45 : vector<8xf32> to vector<8x1xf32>
    %47 = tpu.reciprocal %46 {approx = true} : vector<8x1xf32> -> vector<8x1xf32>
    %48 = vector.broadcast %47 : vector<8x1xf32> to vector<8x128xf32>
    %49 = arith.mulf %44, %48 : vector<8x128xf32>
    %c0_38 = arith.constant 0 : index
    %c0_39 = arith.constant 0 : index
    %50 = vector.load %arg16[%c0_38, %c0_39] : memref<8x128xf32, #tpu.memory_space<vmem>>, vector<8x128xf32>
    tpu.vector_store %arg16[%c0_38, %c0_39], %32 {strides = array<i32>} : memref<8x128xf32, #tpu.memory_space<vmem>>, vector<8x128xf32>,
    %c0_40 = arith.constant 0 : index
    %c0_41 = arith.constant 0 : index
    %51 = vector.load %arg15[%c0_40, %c0_41] : memref<8x128xf32, #tpu.memory_space<vmem>>, vector<8x128xf32>
    tpu.vector_store %arg15[%c0_40, %c0_41], %49 {strides = array<i32>} : memref<8x128xf32, #tpu.memory_space<vmem>>, vector<8x128xf32>,
    return
  }
  func.func @transform_0(%arg0: i32) -> (i32, i32) {
    %c0_i32 = arith.constant 0 : i32
    %c0_i32_0 = arith.constant 0 : i32
    return %arg0, %c0_i32 : i32, i32
  }
  func.func @transform_1(%arg0: i32) -> (i32, i32) {
    %c0_i32 = arith.constant 0 : i32
    %c0_i32_0 = arith.constant 0 : i32
    return %arg0, %c0_i32 : i32, i32
  }
  func.func @transform_2(%arg0: i32) -> (i32, i32) {
    %c0_i32 = arith.constant 0 : i32
    %c0_i32_0 = arith.constant 0 : i32
    return %arg0, %c0_i32 : i32, i32
  }
  func.func @transform_3(%arg0: i32) -> (i32, i32) {
    %c0_i32 = arith.constant 0 : i32
    %c0_i32_0 = arith.constant 0 : i32
    return %arg0, %c0_i32 : i32, i32
  }
  func.func @transform_4(%arg0: i32) -> (i32, i32) {
    %c0_i32 = arith.constant 0 : i32
    %c0_i32_0 = arith.constant 0 : i32
    return %arg0, %c0_i32 : i32, i32
  }
  func.func @transform_5(%arg0: i32) -> (i32, i32) {
    %c0_i32 = arith.constant 0 : i32
    %c0_i32_0 = arith.constant 0 : i32
    %c0_i32_1 = arith.constant 0 : i32
    return %c0_i32, %c0_i32_0 : i32, i32
  }
  func.func @transform_6(%arg0: i32) -> (i32, i32) {
    %c0_i32 = arith.constant 0 : i32
    %c0_i32_0 = arith.constant 0 : i32
    %c0_i32_1 = arith.constant 0 : i32
    return %c0_i32, %c0_i32_0 : i32, i32
  }
  func.func @transform_7(%arg0: i32) -> (i32, i32) {
    %c0_i32 = arith.constant 0 : i32
    %c0_i32_0 = arith.constant 0 : i32
    %c0_i32_1 = arith.constant 0 : i32
    return %c0_i32, %c0_i32_0 : i32, i32
  }
  func.func @transform_8(%arg0: i32) -> (i32, i32) {
    %c0_i32 = arith.constant 0 : i32
    %c0_i32_0 = arith.constant 0 : i32
    %c0_i32_1 = arith.constant 0 : i32
    return %c0_i32, %c0_i32_0 : i32, i32
  }
  func.func @transform_9(%arg0: i32) -> (i32, i32) {
    %c0_i32 = arith.constant 0 : i32
    %c0_i32_0 = arith.constant 0 : i32
    %c0_i32_1 = arith.constant 0 : i32
    return %c0_i32, %c0_i32_0 : i32, i32
  }
  func.func @transform_10(%arg0: i32) -> (i32, i32) {
    %c0_i32 = arith.constant 0 : i32
    %c0_i32_0 = arith.constant 0 : i32
    %c0_i32_1 = arith.constant 0 : i32
    return %c0_i32, %c0_i32_0 : i32, i32
  }
  func.func @transform_11(%arg0: i32) -> (i32, i32) {
    %c0_i32 = arith.constant 0 : i32
    %c0_i32_0 = arith.constant 0 : i32
    %c0_i32_1 = arith.constant 0 : i32
    return %c0_i32, %c0_i32_0 : i32, i32
  }
  func.func @transform_12(%arg0: i32) -> (i32, i32) {
    %c0_i32 = arith.constant 0 : i32
    %c0_i32_0 = arith.constant 0 : i32
    %c0_i32_1 = arith.constant 0 : i32
    return %c0_i32, %c0_i32_0 : i32, i32
  }
  func.func @transform_13(%arg0: i32) -> (i32, i32) {
    %c0_i32 = arith.constant 0 : i32
    %c0_i32_0 = arith.constant 0 : i32
    %c0_i32_1 = arith.constant 0 : i32
    return %c0_i32, %c0_i32_0 : i32, i32
  }
  func.func @transform_14(%arg0: i32) -> (i32, i32) {
    %c0_i32 = arith.constant 0 : i32
    %c0_i32_0 = arith.constant 0 : i32
    return %arg0, %c0_i32 : i32, i32
  }
  func.func @transform_15(%arg0: i32) -> (i32, i32) {
    %c0_i32 = arith.constant 0 : i32
    %c0_i32_0 = arith.constant 0 : i32
    return %arg0, %c0_i32 : i32, i32
  }
}

</mosaic_0001>

<bundles_post_ra>
// kernel: tpu_custom_call.1
= control target key start
LH: loop header
LB: loop body
LE: loop exit
PB: predicated region body
PF: predicated region fallthrough
CT: control target
= control target key end

     0   :  { %21 = vsyncpa [#allocation3], 0  ;;  %vm62_vm0 = vcmask 130048   ;;  %s1095_s0 = inlined_call_operand.vmem [shape: f32[8,16], index: 0, kind: input, shape index: {}]   ;;  %s1096_s1 = inlined_call_operand.vmem [shape: f32[8,512], index: 1, kind: input, shape index: {}]   ;;  %s1097_s2 = inlined_call_operand.vmem [shape: f32[8,32], index: 2, kind: input, shape index: {}]   ;;  %s1098_s3 = inlined_call_operand.vmem [shape: f32[8,192], index: 3, kind: input, shape index: {}]   ;;  %s1099_s4 = inlined_call_operand.vmem [shape: f32[8,6], index: 4, kind: input, shape index: {}]   ;;  %s1100_s5 = inlined_call_operand.vmem [shape: f32[16,32], index: 5, kind: input, shape index: {}]   ;;  %s1101_s6 = inlined_call_operand.vmem [shape: f32[1,32], index: 6, kind: input, shape index: {}]   ;;  %s1102_s7 = inlined_call_operand.vmem [shape: f32[32,128], index: 7, kind: input, shape index: {}]   ;;  %s1103_s8 = inlined_call_operand.vmem [shape: f32[1,128], index: 8, kind: input, shape index: {}]   ;;  %s1104_s9 = inlined_call_operand.vmem [shape: f32[16,512], index: 9, kind: input, shape index: {}]   ;;  %s1105_s10 = inlined_call_operand.vmem [shape: f32[512,32], index: 10, kind: input, shape index: {}]   ;;  %s1106_s11 = inlined_call_operand.vmem [shape: f32[32,192], index: 11, kind: input, shape index: {}]   ;;  %s1107_s12 = inlined_call_operand.vmem [shape: f32[192,128], index: 12, kind: input, shape index: {}]   ;;  %s1108_s13 = inlined_call_operand.vmem [shape: f32[6,128], index: 13, kind: input, shape index: {}]   ;;  %s1109_s14 = inlined_call_operand.hbm [shape: f32[8,128], index: 14, kind: output, shape index: {0}]   ;;  %s1110_s15 = inlined_call_operand.hbm [shape: f32[8,128], index: 15, kind: output, shape index: {1}]  }
   0x1   :  { %v58_v0 = vld [vmem:[%s1104_s9 + $0x20] sm:$0xff]  ;;  %v61_v3 = vld [vmem:[%s1104_s9 + $0x38] sm:$0xff]  ;;  %v59_v4 = vld [vmem:[%s1104_s9 + $0x28] sm:$0xff] }
   0x2   :  { %v54_v1 = vld [vmem:[%s1104_s9] sm:$0xff]  ;;  %80 = vmatpush.msra.mxu2 %v58_v0  ;;  %v60_v5 = vld [vmem:[%s1104_s9 + $0x30] sm:$0xff]  ;;  %140 = vmatpush.msra.mxu3 %v61_v3  ;;  %v57_v6 = vld [vmem:[%s1104_s9 + $0x18] sm:$0xff] }
   0x3   :  { %v720_v2 = vld [vmem:[%s1095_s0] sm:$0xff]  ;;  %100 = vmatpush.msra.mxu1 %v59_v4  ;;  %v55_v7 = vld [vmem:[%s1104_s9 + $0x8] sm:$0xff]  ;;  %v169_v8 = vld [vmem:[%s1105_s10 + $0x78] sm:$0xff] }
   0x4   :  { %81 = vmatpush.msra.mxu2 %v54_v1  ;;  %141 = vmatpush.msra.mxu3 %v57_v6  ;;  %v56_v9 = vld [vmem:[%s1104_s9 + $0x10] sm:$0xff]  ;;  %v185_v10 = vld [vmem:[%s1105_s10 + $0xf8] sm:$0xff]  ;;  %v167_v14 = vld [vmem:[%s1105_s10 + $0x68] sm:$0xff] }
   0x5   :  { %558 = vmatmul.msk.f32.vlgmr.msra.gmra.mxu2 %vm62_vm0, %v720_v2  ;;  %561 = vmatmul.msk.f32.vlgmr.msra.gmra.mxu3 %vm62_vm0, %v720_v2  ;;  %v168_v11 = vld [vmem:[%s1105_s10 + $0x70] sm:$0xff]  ;;  %v217_v12 = vld [vmem:[%s1105_s10 + $0x1f8] sm:$0xff]  ;;  %v183_v18 = vld [vmem:[%s1105_s10 + $0xe8] sm:$0xff] }
   0x6   :  { %120 = vmatpush.msrb.mxu2 %v60_v5  ;;  %101 = vmatpush.msra.mxu1 %v55_v7  ;;  %v184_v13 = vld [vmem:[%s1105_s10 + $0xf0] sm:$0xff]  ;;  %v201_v15 = vld [vmem:[%s1105_s10 + $0x178] sm:$0xff]  ;;  %v166_v19 = vld [vmem:[%s1105_s10 + $0x60] sm:$0xff] }
   0x7   :  { %218 = vmatpush.msra.mxu0 %v169_v8  ;;  %559 = vmatmul.msk.f32.vlgmr.msra.gmra.mxu1 %vm62_vm0, %v720_v2  ;;  %v216_v16 = vld [vmem:[%s1105_s10 + $0x1f0] sm:$0xff]  ;;  %v215_v20 = vld [vmem:[%s1105_s10 + $0x1e8] sm:$0xff]  ;;  %v182_v21 = vld [vmem:[%s1105_s10 + $0xe0] sm:$0xff] }
   0x8   :  { %121 = vmatpush.msrb.mxu2 %v56_v9  ;;  %238 = vmatpush.msrb.mxu1 %v185_v10  ;;  %v200_v17 = vld [vmem:[%s1105_s10 + $0x170] sm:$0xff]  ;;  %v199_v22 = vld [vmem:[%s1105_s10 + $0x168] sm:$0xff]  ;;  %v165_v23 = vld [vmem:[%s1105_s10 + $0x58] sm:$0xff] }
   0x9   :  { %219 = vmatpush.msra.mxu0 %v168_v11  ;;  %278 = vmatpush.msrb.mxu3 %v217_v12  ;;  %v214_v24 = vld [vmem:[%s1105_s10 + $0x1e0] sm:$0xff]  ;;  %v181_v25 = vld [vmem:[%s1105_s10 + $0xd8] sm:$0xff]  ;;  %v164_v27 = vld [vmem:[%s1105_s10 + $0x50] sm:$0xff] }
   0xa   :  { %258 = vmatpush.msra.mxu2 %v201_v15  ;;  %239 = vmatpush.msrb.mxu1 %v184_v13  ;;  %v198_v26 = vld [vmem:[%s1105_s10 + $0x160] sm:$0xff]  ;;  %v213_v28 = vld [vmem:[%s1105_s10 + $0x1d8] sm:$0xff]  ;;  %v180_v29 = vld [vmem:[%s1105_s10 + $0xd0] sm:$0xff] }
   0xb   :  { %220 = vmatpush.msra.mxu0 %v167_v14  ;;  %279 = vmatpush.msrb.mxu3 %v216_v16  ;;  %v197_v30 = vld [vmem:[%s1105_s10 + $0x158] sm:$0xff]  ;;  %v163_v31 = vld [vmem:[%s1105_s10 + $0x48] sm:$0xff]  ;;  %v212_v32 = vld [vmem:[%s1105_s10 + $0x1d0] sm:$0xff] }
   0xc   :  { %259 = vmatpush.msra.mxu2 %v200_v17  ;;  %240 = vmatpush.msrb.mxu1 %v183_v18  ;;  %v179_v33 = vld [vmem:[%s1105_s10 + $0xc8] sm:$0xff]  ;;  %v196_v34 = vld [vmem:[%s1105_s10 + $0x150] sm:$0xff]  ;;  %v162_v35 = vld [vmem:[%s1105_s10 + $0x40] sm:$0xff] }
   0xd   :  { %560 = vmatmul.msk.f32.vlgmr.msrb.gmra.mxu2 %vm62_vm0, %v720_v2  ;;  %221 = vmatpush.msra.mxu0 %v166_v19  ;;  %v178_v36 = vld [vmem:[%s1105_s10 + $0xc0] sm:$0xff]  ;;  %v211_v37 = vld [vmem:[%s1105_s10 + $0x1c8] sm:$0xff]  ;;  %v161_v38 = vld [vmem:[%s1105_s10 + $0x38] sm:$0xff] }
   0xe   :  { %280 = vmatpush.msrb.mxu3 %v215_v20  ;;  %241 = vmatpush.msrb.mxu1 %v182_v21  ;;  %v195_v39 = vld [vmem:[%s1105_s10 + $0x148] sm:$0xff]  ;;  %v210_v40 = vld [vmem:[%s1105_s10 + $0x1c0] sm:$0xff] }
   0xf   :  { %260 = vmatpush.msra.mxu2 %v199_v22  ;;  %222 = vmatpush.msra.mxu0 %v165_v23 }
  0x10   :  { %281 = vmatpush.msrb.mxu3 %v214_v24  ;;  %242 = vmatpush.msrb.mxu1 %v181_v25 }
  0x11   :  { %261 = vmatpush.msra.mxu2 %v198_v26  ;;  %223 = vmatpush.msra.mxu0 %v164_v27 }
  0x12   :  { %282 = vmatpush.msrb.mxu3 %v213_v28  ;;  %243 = vmatpush.msrb.mxu1 %v180_v29 }
  0x13   :  { %262 = vmatpush.msra.mxu2 %v197_v30  ;;  %224 = vmatpush.msra.mxu0 %v163_v31 }
  0x14   :  { %283 = vmatpush.msrb.mxu3 %v212_v32  ;;  %244 = vmatpush.msrb.mxu1 %v179_v33 }
  0x15   :  { %263 = vmatpush.msra.mxu2 %v196_v34 }
  0x16   :  { %22 = vsyncpa [#allocation5], 0  ;;  %225 = vmatpush.msra.mxu0 %v162_v35  ;;  %v177_v41 = vld [vmem:[%s1105_s10 + $0xb8] sm:$0xff]  ;;  %284 = vmatpush.msrb.mxu3 %v211_v37  ;;  %v194_v42 = vld [vmem:[%s1105_s10 + $0x140] sm:$0xff]  ;;  %vm485_vm1 = vcmask 1045504   ;;  %vm334_vm2 = vcmask 261120  }
  0x17   :  { %245 = vmatpush.msrb.mxu1 %v178_v36  ;;  %v160_v43 = vld [vmem:[%s1105_s10 + $0x30] sm:$0xff]  ;;  %264 = vmatpush.msra.mxu2 %v195_v39  ;;  %v209_v44 = vld [vmem:[%s1105_s10 + $0x1b8] sm:$0xff]  ;;  %v159_v47 = vld [vmem:[%s1105_s10 + $0x28] sm:$0xff]  ;;  %vm481_vm3 = vcmask 48128   ;;  %vm434_vm4 = vcmask 523264   ;;  %s544_s20 = sshll.u32 %s1110_s15, 4  ;;  %s545_s20 = int_to_ptr.hbm [resolvable:$true] %s544_s20 }
  0x18   :  { %226 = vmatpush.msra.mxu0 %v161_v38  ;;  %v176_v45 = vld [vmem:[%s1105_s10 + $0xb0] sm:$0xff]  ;;  %285 = vmatpush.msrb.mxu3 %v210_v40  ;;  %v193_v46 = vld [vmem:[%s1105_s10 + $0x138] sm:$0xff]  ;;  %v175_v49 = vld [vmem:[%s1105_s10 + $0xa8] sm:$0xff] }
  0x19   :  { %246 = vmatpush.msrb.mxu1 %v177_v41  ;;  %265 = vmatpush.msra.mxu2 %v194_v42  ;;  %v208_v48 = vld [vmem:[%s1105_s10 + $0x1b0] sm:$0xff]  ;;  %v158_v51 = vld [vmem:[%s1105_s10 + $0x20] sm:$0xff]  ;;  %v207_v52 = vld [vmem:[%s1105_s10 + $0x1a8] sm:$0xff] }
  0x1a   :  { %227 = vmatpush.msra.mxu0 %v160_v43  ;;  %286 = vmatpush.msrb.mxu3 %v209_v44  ;;  %v192_v50 = vld [vmem:[%s1105_s10 + $0x130] sm:$0xff]  ;;  %v174_v53 = vld [vmem:[%s1105_s10 + $0xa0] sm:$0xff]  ;;  %v157_v54 = vld [vmem:[%s1105_s10 + $0x18] sm:$0xff] }
  0x1b   :  { %247 = vmatpush.msrb.mxu1 %v176_v45  ;;  %266 = vmatpush.msra.mxu2 %v193_v46  ;;  %v206_v55 = vld [vmem:[%s1105_s10 + $0x1a0] sm:$0xff]  ;;  %v173_v56 = vld [vmem:[%s1105_s10 + $0x98] sm:$0xff]  ;;  %v156_v57 = vld [vmem:[%s1105_s10 + $0x10] sm:$0xff] }
  0x1c   :  { %228 = vmatpush.msra.mxu0 %v159_v47  ;;  %287 = vmatpush.msrb.mxu3 %v208_v48  ;;  %v172_v58 = vld [vmem:[%s1105_s10 + $0x90] sm:$0xff]  ;;  %v155_v59 = vld [vmem:[%s1105_s10 + $0x8] sm:$0xff]  ;;  %v205_v62 = vld [vmem:[%s1105_s10 + $0x198] sm:$0xff] }
  0x1d   :  { %248 = vmatpush.msrb.mxu1 %v175_v49  ;;  %267 = vmatpush.msra.mxu2 %v192_v50  ;;  %v171_v60 = vld [vmem:[%s1105_s10 + $0x88] sm:$0xff]  ;;  %v154_v63 = vld [vmem:[%s1105_s10] sm:$0xff]  ;;  %v204_v3 = vld [vmem:[%s1105_s10 + $0x190] sm:$0xff] }
  0x1e   :  { %229 = vmatpush.msra.mxu0 %v158_v51  ;;  %288 = vmatpush.msrb.mxu3 %v207_v52  ;;  %v191_v61 = vld [vmem:[%s1105_s10 + $0x128] sm:$0xff]  ;;  %v170_v0 = vld [vmem:[%s1105_s10 + $0x80] sm:$0xff]  ;;  %v189_v4 = vld [vmem:[%s1105_s10 + $0x118] sm:$0xff] }
  0x1f   :  { %249 = vmatpush.msrb.mxu1 %v174_v53  ;;  %268 = vmatpush.msra.mxu2 %v191_v61  ;;  %v190_v1 = vld [vmem:[%s1105_s10 + $0x120] sm:$0xff]  ;;  %v203_v5 = vld [vmem:[%s1105_s10 + $0x188] sm:$0xff]  ;;  %v188_v6 = vld [vmem:[%s1105_s10 + $0x110] sm:$0xff] }
  0x20   :  { %230 = vmatpush.msra.mxu0 %v157_v54  ;;  %289 = vmatpush.msrb.mxu3 %v206_v55  ;;  %v202_v7 = vld [vmem:[%s1105_s10 + $0x180] sm:$0xff]  ;;  %v53_v8 = vld [vmem:[%s1100_s5 + $0x8] sm:$0xff]  ;;  %v149_v16 = vld [vmem:[%s1096_s1 + $0x18] sm:$0xff] }
  0x21   :  { %250 = vmatpush.msrb.mxu1 %v173_v56  ;;  %269 = vmatpush.msra.mxu2 %v190_v1  ;;  %v187_v9 = vld [vmem:[%s1105_s10 + $0x108] sm:$0xff]  ;;  %v186_v10 = vld [vmem:[%s1105_s10 + $0x100] sm:$0xff]  ;;  %v148_v21 = vld [vmem:[%s1096_s1 + $0x10] sm:$0xff]  ;;  %s533_s10 = sshll.u32 %s1109_s14, 4  ;;  %s534_s10 = int_to_ptr.hbm [resolvable:$true] %s533_s10 }
  0x22   :  { %231 = vmatpush.msra.mxu0 %v156_v57  ;;  %290 = vmatpush.msrb.mxu3 %v205_v62  ;;  %v52_v11 = vld [vmem:[%s1100_s5] sm:$0xff]  ;;  %v147_v12 = vld [vmem:[%s1096_s1 + $0x8] sm:$0xff]  ;;  %v364_v24 = vld [vmem:[%s1106_s11 + $0x30] sm:$0xff] }
  0x23   :  { %251 = vmatpush.msrb.mxu1 %v172_v58  ;;  %270 = vmatpush.msra.mxu2 %v189_v4  ;;  %v146_v14 = vld [vmem:[%s1096_s1] sm:$0xff]  ;;  %v365_v25 = vld [vmem:[%s1106_s11 + $0x38] sm:$0xff]  ;;  %v328_v28 = vld [vmem:[%s1102_s7 + $0x10] sm:$0xff] }
  0x24   :  { %232 = vmatpush.msra.mxu0 %v155_v59  ;;  %291 = vmatpush.msrb.mxu3 %v204_v3  ;;  %v329_v26 = vld [vmem:[%s1102_s7 + $0x18] sm:$0xff]  ;;  %v362_v27 = vld [vmem:[%s1106_s11 + $0x20] sm:$0xff]  ;;  %v360_v29 = vld [vmem:[%s1106_s11 + $0x10] sm:$0xff] }
  0x25   :  { %252 = vmatpush.msrb.mxu1 %v171_v60  ;;  %271 = vmatpush.msra.mxu2 %v188_v6  ;;  %v361_v30 = vld [vmem:[%s1106_s11 + $0x18] sm:$0xff]  ;;  %v327_v31 = vld [vmem:[%s1102_s7 + $0x8] sm:$0xff]  ;;  %v358_v32 = vld [vmem:[%s1106_s11] sm:$0xff] }
  0x26   :  { %233 = vmatpush.msra.mxu0 %v154_v63  ;;  %292 = vmatpush.msrb.mxu3 %v203_v5  ;;  %v359_v33 = vld [vmem:[%s1106_s11 + $0x8] sm:$0xff]  ;;  %v326_v34 = vld [vmem:[%s1102_s7] sm:$0xff]  ;;  %v425_v35 = vld [vmem:[%s1107_s12 + $0x78] sm:$0xff] }
  0x27   :  { %253 = vmatpush.msrb.mxu1 %v170_v0  ;;  %272 = vmatpush.msra.mxu2 %v187_v9  ;;  %v424_v36 = vld [vmem:[%s1107_s12 + $0x70] sm:$0xff]  ;;  %v423_v37 = vld [vmem:[%s1107_s12 + $0x68] sm:$0xff]  ;;  %v433_v38 = vld [vmem:[%s1107_s12 + $0xb8] sm:$0xff] }
  0x28   :  { %293 = vmatpush.msrb.mxu3 %v202_v7  ;;  %438 = vmatpush.msrb.mxu0 %v425_v35  ;;  %v432_v39 = vld [vmem:[%s1107_s12 + $0xb0] sm:$0xff]  ;;  %v422_v40 = vld [vmem:[%s1107_s12 + $0x60] sm:$0xff]  ;;  %v431_v42 = vld [vmem:[%s1107_s12 + $0xa8] sm:$0xff] }
  0x29   :  { %273 = vmatpush.msra.mxu2 %v186_v10  ;;  %350 = vmatpush.msra.mxu1 %v329_v26  ;;  %v480_v41 = vld [vmem:[%s1108_s13] sm:$0x3f]  ;;  %v421_v43 = vld [vmem:[%s1107_s12 + $0x58] sm:$0xff]  ;;  %v420_v44 = vld [vmem:[%s1107_s12 + $0x50] sm:$0xff] }
  0x2a   :  { %312 = vmatpush.msra.mxu3 %v53_v8  ;;  %439 = vmatpush.msrb.mxu0 %v424_v36  ;;  %v419_v45 = vld [vmem:[%s1107_s12 + $0x48] sm:$0xff]  ;;  %v418_v47 = vld [vmem:[%s1107_s12 + $0x40] sm:$0xff]  ;;  %v417_v50 = vld [vmem:[%s1107_s12 + $0x38] sm:$0xff] }
  0x2b   :  { %378 = vmatpush.msrb.mxu2 %v364_v24  ;;  %351 = vmatpush.msra.mxu1 %v328_v28  ;;  %v416_v51 = vld [vmem:[%s1107_s12 + $0x30] sm:$0xff]  ;;  %v415_v54 = vld [vmem:[%s1107_s12 + $0x28] sm:$0xff]  ;;  %v571_v58 = vld [vmem:[%s1101_s6] ss:$0 sm:$0xff]  ;;  %s630_s6 = smov [#allocation2]  }
  0x2c   :  { %313 = vmatpush.msra.mxu3 %v52_v11  ;;  %440 = vmatpush.msrb.mxu0 %v423_v37  ;;  %v323_v60 = vld [vmem:[%s1097_s2] sm:$0xff]  ;;  %v413_v3 = vld [vmem:[%s1107_s12 + $0x18] sm:$0xff]  ;;  %v412_v5 = vld [vmem:[%s1107_s12 + $0x10] sm:$0xff]  ;;  %s531_s21 = sshll.u32 %s630_s6, 4  ;;  %s532_s21 = int_to_ptr.vmem [resolvable:$true] %s531_s21 }
  0x2d   :  { %379 = vmatpush.msrb.mxu2 %v362_v27  ;;  %352 = vmatpush.msra.mxu1 %v327_v31  ;;  %v414_v0 = vld [vmem:[%s1107_s12 + $0x20] sm:$0xff]  ;;  %v429_v4 = vld [vmem:[%s1107_s12 + $0x98] sm:$0xff]  ;;  %v428_v6 = vld [vmem:[%s1107_s12 + $0x90] sm:$0xff] }
  0x2e   :  { %441 = vmatpush.msrb.mxu0 %v422_v40  ;;  %v430_v1 = vld [vmem:[%s1107_s12 + $0xa0] sm:$0xff]  ;;  %v411_v7 = vld [vmem:[%s1107_s12 + $0x8] sm:$0xff] }
  0x2f   :  { %380 = vmatpush.msrb.mxu2 %v360_v29  ;;  %353 = vmatpush.msra.mxu1 %v326_v34  ;;  %v427_v8 = vld [vmem:[%s1107_s12 + $0x88] sm:$0xff]  ;;  %v479_v9 = vld [vmem:[%s1099_s4] sm:$0xff] }
  0x30   :  { %442 = vmatpush.msrb.mxu0 %v421_v43  ;;  %v410_v10 = vld [vmem:[%s1107_s12] sm:$0xff] }
  0x31   :  { %381 = vmatpush.msrb.mxu2 %v358_v32  ;;  %v426_v11 = vld [vmem:[%s1107_s12 + $0x80] sm:$0xff] }
  0x32   :  { %443 = vmatpush.msrb.mxu0 %v420_v44 }
  0x34   :  { %444 = vmatpush.msrb.mxu0 %v419_v45 }
  0x36   :  { %445 = vmatpush.msrb.mxu0 %v418_v47 }
  0x38   :  { %446 = vmatpush.msrb.mxu0 %v417_v50 }
  0x3a   :  { %447 = vmatpush.msrb.mxu0 %v416_v51 }
  0x3c   :  { %448 = vmatpush.msrb.mxu0 %v415_v54 }
  0x3e   :  { %449 = vmatpush.msrb.mxu0 %v414_v0 }
  0x40   :  { %450 = vmatpush.msrb.mxu0 %v413_v3 }
  0x42   :  { %451 = vmatpush.msrb.mxu0 %v412_v5 }
  0x44   :  { %452 = vmatpush.msrb.mxu0 %v411_v7 }
  0x46   :  { %453 = vmatpush.msrb.mxu0 %v410_v10 }
  0x84   :  { %v103_v13 = vpop.f32.mrf.mxu1 }
  0x85   :  { %v151_v15 = vmul.f32 %v147_v12, %v103_v13  ;;  %v406_v12 = vld [vmem:[%s1098_s3] sm:$0xff]  ;;  %v407_v13 = vld [vmem:[%s1098_s3 + $0x8] sm:$0xff]  ;;  %s629_s3 = smov [#allocation4]  }
  0x86   :  { %s542_s18 = sshll.u32 %s629_s3, 4  ;;  %s543_s18 = int_to_ptr.vmem [resolvable:$true] %s542_s18 }
  0x87   :  { %254 = vmatmul.f32.vlgmr.msrb.gmra.mxu1 %v151_v15 }
  0x88   :  { %v83_v17 = vpop.f32.mrf.mxu2  ;;  %v143_v19 = vpop.f32.mrf.mxu3  ;;  %466 = vmatpush.msrb.mxu1 %v433_v38 }
  0x89   :  { %v150_v18 = vmul.f32 %v146_v14, %v83_v17  ;;  %v153_v20 = vmul.f32 %v149_v16, %v143_v19  ;;  %v510_v19 = vlaneseq }
  0x8a   :  { %467 = vmatpush.msrb.mxu1 %v432_v39 }
  0x8b   :  { %234 = vmatmul.f32.vlgmr.msra.gmra.mxu0 %v150_v18  ;;  %294 = vmatmul.f32.vlgmr.msrb.gmra.mxu3 %v153_v20  ;;  %v572_v20 = vld [vmem:[%s1103_s8] ss:$0 sm:$0xff] }
  0x8c   :  { %398 = vmatpush.msrb.mxu3 %v365_v25  ;;  %468 = vmatpush.msrb.mxu1 %v431_v42 }
  0x8e   :  { %469 = vmatpush.msrb.mxu1 %v430_v1 }
  0x90   :  { %v123_v22 = vpop.f32.mrf.mxu2  ;;  %470 = vmatpush.msrb.mxu1 %v429_v4 }
  0x91   :  { %v152_v23 = vmul.f32 %v148_v21, %v123_v22 }
  0x92   :  { %471 = vmatpush.msrb.mxu1 %v428_v6 }
  0x93   :  { %274 = vmatmul.f32.vlgmr.msra.gmra.mxu2 %v152_v23  ;;  %562 = vmatmul.msk.f32.vlgmr.msra.gmra.mxu3 %vm62_vm0, %v720_v2  ;;  %v363_v2 = vld [vmem:[%s1106_s11 + $0x28] sm:$0xff]  ;;  %v511_v23 = vand.u32 127, %v510_v19 }
  0x94   :  { %399 = vmatpush.msrb.mxu3 %v363_v2  ;;  %567 = vmatpush.msk.msra.mxu2 %vm485_vm1, %v480_v41 }
  0x95   :  { %472 = vmatpush.msrb.mxu1 %v427_v8  ;;  %vm512_vm5 = vcmp.lt.s32.totalorder %v511_v23, 6 }
  0x96   :  { %400 = vmatpush.msrb.mxu3 %v361_v30 }
  0x97   :  { %473 = vmatpush.msrb.mxu1 %v426_v11 }
  0x98   :  { %401 = vmatpush.msrb.mxu3 %v359_v33 }
 0x104   :  { %v255_v49 = vpop.f32.mrf.mxu1 }
 0x108   :  { %v235_v48 = vpop.f32.mrf.mxu0 }
 0x109   :  { %v256_v52 = vadd.f32 %v255_v49, %v235_v48 }
 0x10e   :  { %v295_v46 = vpop.f32.mrf.mxu3 }
 0x116   :  { %v275_v53 = vpop.f32.mrf.mxu2  ;;  %v315_v56 = vpop.f32.mrf.mxu3 }
 0x117   :  { %v276_v55 = vadd.f32 %v275_v53, %v256_v52 }
 0x119   :  { %v296_v57 = vadd.f32 %v295_v46, %v276_v55 }
 0x11b   :  { %v316_v59 = vadd.f32 %v315_v56, %v296_v57 }
 0x11d   :  { %v322_v61 = vadd.f32 %v571_v58, %v316_v59 }
 0x11f   :  { %v324_v62 = vadd.f32 %v323_v60, %v322_v61 }
 0x121   :  { %v325_v63 = vmax.f32 %v324_v62, 0.0 }
 0x123   :  { %563 = vmatmul.msk.f32.vlgmr.msra.gmra.mxu1 %vm334_vm2, %v325_v63  ;;  %564 = vmatmul.msk.f32.vlgmr.msrb.gmra.mxu2 %vm334_vm2, %v325_v63 }
 0x124   :  { %565 = vmatmul.msk.f32.vlgmr.msrb.gmra.mxu3 %vm334_vm2, %v325_v63 }
 0x12b   :  { %568 = vmatmul.msk.f32.vlgmr.msra.gmra.mxu2 %vm481_vm3, %v479_v9 }
 0x1a0   :  { %v355_v18 = vpop.f32.mrf.mxu1 }
 0x1a1   :  { %v356_v24 = vadd.f32 %v572_v20, %v355_v18 }
 0x1a6   :  { %v383_v14 = vpop.f32.mrf.mxu2 }
 0x1a7   :  { %v408_v15 = vmul.f32 %v406_v12, %v383_v14  ;;  %v403_v16 = vpop.f32.mrf.mxu3 }
 0x1a8   :  { %v409_v17 = vmul.f32 %v407_v13, %v403_v16 }
 0x1a9   :  { %454 = vmatmul.f32.vlgmr.msrb.gmra.mxu0 %v408_v15 }
 0x1aa   :  { %566 = vmatmul.msk.f32.vlgmr.msrb.gmra.mxu1 %vm434_vm4, %v409_v17 }
 0x1ae   :  { %v506_v26 = vpop.f32.mrf.mxu2 }
 0x226   :  { %v455_v21 = vpop.f32.mrf.mxu0 }
 0x227   :  { %v475_v22 = vpop.f32.mrf.mxu1 }
 0x228   :  { %v476_v25 = vadd.f32 %v475_v22, %v455_v21 }
 0x22a   :  { %v478_v27 = vadd.f32 %v476_v25, %v356_v24 }
 0x22c   :  { %v509_v2 = vadd.f32 %v506_v26, %v478_v27 }
 0x22e   :  { %524 = vst [vmem:[#allocation4] sm:$0xff] %v509_v2  ;;  %v513_v28 = vsel %vm512_vm5, %v509_v2, -1e+30 }
 0x22f   :  { %514 = vmax.xlane.f32.xlu0 %v513_v28  ;;  %547 = dma.vmem_to_hbm [thread:$0]  %s543_s18, 128, %s545_s20, [#allocation5]  }
 0x2a2   :  { %v515_v29 = vpop.xlane.xlu0 %514 }
 0x2a3   :  { %v516_v30 = vsub.f32 %v513_v28, %v515_v29 }
 0x2a5   :  { %v517_v31 = vmul.f32 1.442695, %v516_v30 }
 0x2a7   :  { %573 = vpow2.f32 %v517_v31 }
 0x2ad   :  { %v574_v32 = vpop.eup %573 }
 0x2ae   :  { %v519_v33 = vsel %vm512_vm5, %v574_v32, 0.0 }
 0x2af   :  { %520 = vadd.xlane.f32.xlu0 %v519_v33 }
 0x322   :  { %v521_v34 = vpop.xlane.xlu0 %520 }
 0x323   :  { %575 = vrcp.f32 %v521_v34 }
 0x329   :  { %v576_v35 = vpop.eup %575 }
 0x32a   :  { %v523_v36 = vmul.f32 %v576_v35, %v519_v33 }
 0x32c   :  { %525 = vst [vmem:[#allocation2] sm:$0xff] %v523_v36 }
 0x32d   :  { %536 = dma.vmem_to_hbm [thread:$0]  %s532_s21, 128, %s534_s10, [#allocation3]  }
 0x32e   :  { %625 = dma.done.wait [#allocation3], 128  }
 0x32f   :  { %626 = vsyncadd [#allocation3], 4294967168 }
 0x330   :  { %627 = dma.done.wait [#allocation5], 128  }
 0x331   :  { %628 = vsyncadd [#allocation5], 4294967168 }
 0x332   :  { %556 = vsyncpa [#allocation3], 1 }
 0x333   :  { %557 = vsyncpa [#allocation5], 1 }

</bundles_post_ra>
